<compile_context>
chip_gen: v5e
topology: v5e:2x2
jax: 0.10.0
libtpu: 0.0.40
codegen_flags: <defaults>
</compile_context>

<pallas_src>
SMOOTHING_COEFFICIENT = 1.0

import functools

import jax
import jax.numpy as jnp
from jax.experimental import pallas as pl
from jax.experimental.pallas import tpu as pltpu

_NBLK_MAX = 64 * 1024           # max elements per spatial chunk (f32 => 256 KiB/row)
_TARGET_BLOCK_BYTES = 4 << 20   # ~4 MiB per input block (f32 accounting)
_VMEM_LIMIT_BYTES = 48 << 20    # < v7x 64 MiB physical, plenty on v5e/v6e (128 MiB)


def _round_up(x: int, m: int) -> int:
    return (x + m - 1) // m * m


def _cdiv(a: int, b: int) -> int:
    return (a + b - 1) // b


def _choose_nblk(n: int) -> int:
    """Lane-dense spatial chunk size."""
    if n <= _NBLK_MAX:
        # Full-extent last dim: always legal, zero lane padding, no mask needed.
        return n
    # Balance chunks so the last chunk's padding is < 128 lanes.
    n_chunks = _cdiv(n, _NBLK_MAX)
    return _round_up(_cdiv(n, n_chunks), 128)


def _sublane_multiple(*dtypes) -> int:
    """Sublane packing requirement: f32 -> 8, bf16 -> 16, int8/bool -> 32."""
    return max(32 // min(jnp.dtype(d).itemsize for d in dtypes), 8)


def _choose_bblk(b: int, nblk: int, sublane: int) -> int:
    """Samples per grid step: full batch if tiny, else sublane-aligned ~4 MiB blocks."""
    if b <= sublane:
        return b
    bblk = sublane
    b_ceil = _round_up(b, sublane)
    while (bblk < 512
           and bblk * 2 <= b_ceil
           and bblk * 2 * nblk * 4 <= _TARGET_BLOCK_BYTES):
        bblk *= 2
    return bblk


def _dice_kernel(preds_ref, labels_ref, loss_ref, inter_acc, denom_acc,
                 *, logits: bool, n_valid: int, nblk: int, bblk: int, masked: bool):
    """Grid = (batch_blocks, spatial_chunks). Block = (bblk, nblk)."""
    j = pl.program_id(1)
    last = pl.num_programs(1) - 1

    @pl.when(j == 0)
    def _init():
        inter_acc[...] = jnp.zeros_like(inter_acc)
        denom_acc[...] = jnp.zeros_like(denom_acc)

    p = preds_ref[...].astype(jnp.float32)   # (bblk, nblk)
    l = labels_ref[...].astype(jnp.float32)  # (bblk, nblk)
    if logits:
        # sigmoid(x) == 0.5*tanh(0.5*x) + 0.5 : single EUP op, divide-free.
        p = 0.5 * jnp.tanh(0.5 * p) + 0.5

    def _accumulate(pv, lv):
        inter_acc[...] += jnp.sum(pv * lv, axis=-1, keepdims=True)
        denom_acc[...] += jnp.sum(pv + lv, axis=-1, keepdims=True)

    if masked:
        # Only the final spatial chunk is partial: mask only there.
        @pl.when(j < last)
        def _interior():
            _accumulate(p, l)

        @pl.when(j == last)
        def _edge():
            col = jax.lax.broadcasted_iota(jnp.int32, (bblk, nblk), 1) + j * nblk
            valid = col < n_valid
            _accumulate(jnp.where(valid, p, 0.0), jnp.where(valid, l, 0.0))
    else:
        _accumulate(p, l)

    @pl.when(j == last)
    def _finalize():
        dice = (2.0 * inter_acc[...] + SMOOTHING_COEFFICIENT) / (
            denom_acc[...] + SMOOTHING_COEFFICIENT)
        loss_ref[...] = 1.0 - dice


def binary_dice_loss(preds: jax.Array, labels: jax.Array, logits: bool = True) -> jax.Array:
    """Mean over the batch of (1 - dice_coefficient). Matches BinaryDiceLoss.forward."""
    if preds.ndim == 4:
        assert preds.shape[1] == 1, "expected single-channel predictions (NCHW, C==1)"
        preds = preds[:, 0]
    if labels.ndim == 4:
        assert labels.shape[1] == 1, "expected single-channel labels (NCHW, C==1)"
        labels = labels[:, 0]
    assert preds.ndim == 3 and labels.shape == preds.shape

    B, H, W = preds.shape
    N = H * W
    preds2 = preds.reshape(B, N)
    labels2 = labels.reshape(B, N)
    if labels2.dtype == jnp.bool_:
        labels2 = labels2.astype(jnp.int8)  # keep label traffic narrow (HBM-bound)

    nblk = _choose_nblk(N)
    n_chunks = _cdiv(N, nblk)
    masked = (n_chunks * nblk != N)          # only possible when n_chunks > 1
    sublane = _sublane_multiple(preds2.dtype, labels2.dtype)
    bblk = _choose_bblk(B, nblk, sublane)
    n_bblocks = _cdiv(B, bblk)

    kernel = functools.partial(
        _dice_kernel, logits=logits, n_valid=N, nblk=nblk, bblk=bblk, masked=masked)

    per_sample = pl.pallas_call(
        kernel,
        out_shape=jax.ShapeDtypeStruct((B, 1), jnp.float32),
        grid_spec=pltpu.PrefetchScalarGridSpec(
            num_scalar_prefetch=0,
            grid=(n_bblocks, n_chunks),
            in_specs=[
                pl.BlockSpec((bblk, nblk), lambda i, j: (i, j)),
                pl.BlockSpec((bblk, nblk), lambda i, j: (i, j)),
            ],
            out_specs=pl.BlockSpec((bblk, 1), lambda i, j: (i, 0)),
            scratch_shapes=[
                pltpu.VMEM((bblk, 1), jnp.float32),  # inter = sum(p*l)
                pltpu.VMEM((bblk, 1), jnp.float32),  # denom = sum(p) + sum(l)
            ],
        ),
        compiler_params=pltpu.CompilerParams(
            # batch-block axis carries no state -> parallel; on v7x this could be
            # pltpu.CORE_PARALLEL to shard across the two TensorCores.
            # spatial-chunk axis carries the accumulators -> arbitrary.
            dimension_semantics=("parallel", "arbitrary"),
            vmem_limit_bytes=_VMEM_LIMIT_BYTES,
        ),
    )(preds2, labels2)

    return jnp.mean(per_sample[:, 0])


def _reference(preds, labels, logits=True):
    # Pure-JAX reference mirroring the PyTorch forward.
    if preds.ndim == 4:
        preds = preds[:, 0]
    if labels.ndim == 4:
        labels = labels[:, 0]
    p = jax.nn.sigmoid(preds) if logits else preds
    labels = labels.astype(jnp.float32)
    inter = jnp.sum(p * labels, axis=(1, 2))
    denom = jnp.sum(labels, axis=(1, 2)) + jnp.sum(p, axis=(1, 2))
    return jnp.mean(1.0 - (2.0 * inter + SMOOTHING_COEFFICIENT) / (denom + SMOOTHING_COEFFICIENT))


if __name__ == "__main__":
    key = jax.random.PRNGKey(0)
    k1, k2, k3, k4, k5, k6 = jax.random.split(key, 6)

    # Case 1: NCHW logits, single spatial chunk, full-batch block (the module's shape).
    B, C, H, W = 2, 1, 16, 16
    preds = jax.random.normal(k1, (B, C, H, W), dtype=jnp.float32)
    labels = (jax.random.uniform(k2, (B, H, W)) > 0.5).astype(jnp.float32)
    loss = jax.block_until_ready(binary_dice_loss(preds, labels, logits=True))
    ref = _reference(preds, labels, logits=True)
    assert jnp.allclose(loss, ref, atol=1e-5, rtol=1e-4), (loss, ref)

    # Case 2: batch larger than one sublane block, partial last batch block.
    B2, H2, W2 = 20, 24, 24
    preds_b = jax.random.normal(k3, (B2, H2, W2), dtype=jnp.float32)
    labels_b = (jax.random.uniform(k4, (B2, H2, W2)) > 0.5).astype(jnp.float32)
    loss_b = jax.block_until_ready(binary_dice_loss(preds_b, labels_b, logits=True))
    ref_b = _reference(preds_b, labels_b, logits=True)
    assert jnp.allclose(loss_b, ref_b, atol=1e-5, rtol=1e-4), (loss_b, ref_b)

    # Case 3: multi-chunk spatial axis with a masked partial last chunk (N > 64K).
    B3, H3, W3 = 2, 260, 260
    preds_c = jax.random.normal(k5, (B3, H3, W3), dtype=jnp.float32)
    labels_c = (jax.random.uniform(k6, (B3, H3, W3)) > 0.5).astype(jnp.float32)
    loss_c = jax.block_until_ready(binary_dice_loss(preds_c, labels_c, logits=True))
    ref_c = _reference(preds_c, labels_c, logits=True)
    assert jnp.allclose(loss_c, ref_c, atol=1e-4, rtol=1e-4), (loss_c, ref_c)

    print("KERNEL_OK")
</pallas_src>

<mosaic_0001>
module attributes {stable_mosaic.version = 11 : i64} {
  func.func @_dice_kernel(%arg0: i32, %arg1: i32, %arg2: memref<2x256xf32, #tpu.memory_space<vmem>>, %arg3: memref<2x256xf32, #tpu.memory_space<vmem>>, %arg4: memref<2x1xf32, #tpu.memory_space<vmem>>, %arg5: memref<2x1xf32, #tpu.memory_space<vmem>>, %arg6: memref<2x1xf32, #tpu.memory_space<vmem>>) attributes {dimension_semantics = [#tpu.dimension_semantics<parallel>, #tpu.dimension_semantics<arbitrary>], iteration_bounds = array<i64: 1, 1>, scalar_prefetch = 0 : i64, scratch_operands = 2 : i64, tpu.core_type = #tpu.core_type<tc>, window_params = [{transform_indices = @transform_0, window_bounds = array<i64: 2, 256>}, {transform_indices = @transform_1, window_bounds = array<i64: 2, 256>}, {transform_indices = @transform_2, window_bounds = array<i64: 2, 1>}]} {
    %c0_i32 = arith.constant 0 : i32
    %0 = arith.cmpi eq, %arg1, %c0_i32 : i32
    %1 = arith.extui %0 : i1 to i32
    %c0_i32_0 = arith.constant 0 : i32
    %2 = arith.cmpi ne, %1, %c0_i32_0 : i32
    scf.if %2 {
      %cst_18 = arith.constant 0.000000e+00 : f32
      %27 = vector.broadcast %cst_18 : f32 to vector<2x1xf32>
      %c0_19 = arith.constant 0 : index
      %c0_20 = arith.constant 0 : index
      %28 = vector.load %arg5[%c0_19, %c0_20] : memref<2x1xf32, #tpu.memory_space<vmem>>, vector<2x1xf32>
      tpu.vector_store %arg5[%c0_19, %c0_20], %27 {strides = array<i32>} : memref<2x1xf32, #tpu.memory_space<vmem>>, vector<2x1xf32>,
      %cst_21 = arith.constant 0.000000e+00 : f32
      %29 = vector.broadcast %cst_21 : f32 to vector<2x1xf32>
      %c0_22 = arith.constant 0 : index
      %c0_23 = arith.constant 0 : index
      %30 = vector.load %arg6[%c0_22, %c0_23] : memref<2x1xf32, #tpu.memory_space<vmem>>, vector<2x1xf32>
      tpu.vector_store %arg6[%c0_22, %c0_23], %29 {strides = array<i32>} : memref<2x1xf32, #tpu.memory_space<vmem>>, vector<2x1xf32>,
    } else {
    }
    %c0 = arith.constant 0 : index
    %c0_1 = arith.constant 0 : index
    %3 = vector.load %arg2[%c0, %c0_1] : memref<2x256xf32, #tpu.memory_space<vmem>>, vector<2x256xf32>
    %c0_2 = arith.constant 0 : index
    %c0_3 = arith.constant 0 : index
    %4 = vector.load %arg3[%c0_2, %c0_3] : memref<2x256xf32, #tpu.memory_space<vmem>>, vector<2x256xf32>
    %cst = arith.constant 5.000000e-01 : f32
    %5 = vector.broadcast %cst : f32 to vector<2x256xf32>
    %6 = arith.mulf %5, %3 : vector<2x256xf32>
    %7 = math.tanh %6 : vector<2x256xf32>
    %cst_4 = arith.constant 5.000000e-01 : f32
    %8 = vector.broadcast %cst_4 : f32 to vector<2x256xf32>
    %9 = arith.mulf %8, %7 : vector<2x256xf32>
    %cst_5 = arith.constant 5.000000e-01 : f32
    %10 = vector.broadcast %cst_5 : f32 to vector<2x256xf32>
    %11 = arith.addf %9, %10 : vector<2x256xf32>
    %c0_6 = arith.constant 0 : index
    %c0_7 = arith.constant 0 : index
    %12 = vector.load %arg5[%c0_6, %c0_7] : memref<2x1xf32, #tpu.memory_space<vmem>>, vector<2x1xf32>
    %13 = arith.mulf %11, %4 : vector<2x256xf32>
    %cst_8 = arith.constant dense<0.000000e+00> : vector<2xf32>
    %14 = vector.multi_reduction <add>, %13, %cst_8 [1] : vector<2x256xf32> to vector<2xf32>
    %15 = vector.shape_cast %14 : vector<2xf32> to vector<2x1xf32>
    %16 = arith.addf %12, %15 : vector<2x1xf32>
    %c0_9 = arith.constant 0 : index
    %c0_10 = arith.constant 0 : index
    %17 = vector.load %arg5[%c0_9, %c0_10] : memref<2x1xf32, #tpu.memory_space<vmem>>, vector<2x1xf32>
    tpu.vector_store %arg5[%c0_9, %c0_10], %16 {strides = array<i32>} : memref<2x1xf32, #tpu.memory_space<vmem>>, vector<2x1xf32>,
    %c0_11 = arith.constant 0 : index
    %c0_12 = arith.constant 0 : index
    %18 = vector.load %arg6[%c0_11, %c0_12] : memref<2x1xf32, #tpu.memory_space<vmem>>, vector<2x1xf32>
    %19 = arith.addf %11, %4 : vector<2x256xf32>
    %cst_13 = arith.constant dense<0.000000e+00> : vector<2xf32>
    %20 = vector.multi_reduction <add>, %19, %cst_13 [1] : vector<2x256xf32> to vector<2xf32>
    %21 = vector.shape_cast %20 : vector<2xf32> to vector<2x1xf32>
    %22 = arith.addf %18, %21 : vector<2x1xf32>
    %c0_14 = arith.constant 0 : index
    %c0_15 = arith.constant 0 : index
    %23 = vector.load %arg6[%c0_14, %c0_15] : memref<2x1xf32, #tpu.memory_space<vmem>>, vector<2x1xf32>
    tpu.vector_store %arg6[%c0_14, %c0_15], %22 {strides = array<i32>} : memref<2x1xf32, #tpu.memory_space<vmem>>, vector<2x1xf32>,
    %c0_i32_16 = arith.constant 0 : i32
    %24 = arith.cmpi eq, %arg1, %c0_i32_16 : i32
    %25 = arith.extui %24 : i1 to i32
    %c0_i32_17 = arith.constant 0 : i32
    %26 = arith.cmpi ne, %25, %c0_i32_17 : i32
    scf.if %26 {
      %c0_18 = arith.constant 0 : index
      %c0_19 = arith.constant 0 : index
      %27 = vector.load %arg5[%c0_18, %c0_19] : memref<2x1xf32, #tpu.memory_space<vmem>>, vector<2x1xf32>
      %cst_20 = arith.constant 2.000000e+00 : f32
      %28 = vector.broadcast %cst_20 : f32 to vector<2x1xf32>
      %29 = arith.mulf %28, %27 : vector<2x1xf32>
      %cst_21 = arith.constant 1.000000e+00 : f32
      %30 = vector.broadcast %cst_21 : f32 to vector<2x1xf32>
      %31 = arith.addf %29, %30 : vector<2x1xf32>
      %c0_22 = arith.constant 0 : index
      %c0_23 = arith.constant 0 : index
      %32 = vector.load %arg6[%c0_22, %c0_23] : memref<2x1xf32, #tpu.memory_space<vmem>>, vector<2x1xf32>
      %cst_24 = arith.constant 1.000000e+00 : f32
      %33 = vector.broadcast %cst_24 : f32 to vector<2x1xf32>
      %34 = arith.addf %32, %33 : vector<2x1xf32>
      %35 = arith.divf %31, %34 : vector<2x1xf32>
      %cst_25 = arith.constant 1.000000e+00 : f32
      %36 = vector.broadcast %cst_25 : f32 to vector<2x1xf32>
      %37 = arith.subf %36, %35 : vector<2x1xf32>
      %c0_26 = arith.constant 0 : index
      %c0_27 = arith.constant 0 : index
      %38 = vector.load %arg4[%c0_26, %c0_27] : memref<2x1xf32, #tpu.memory_space<vmem>>, vector<2x1xf32>
      tpu.vector_store %arg4[%c0_26, %c0_27], %37 {strides = array<i32>} : memref<2x1xf32, #tpu.memory_space<vmem>>, vector<2x1xf32>,
    } else {
    }
    return
  }
  func.func @transform_0(%arg0: i32, %arg1: i32) -> (i32, i32) {
    %c0_i32 = arith.constant 0 : i32
    return %arg0, %arg1 : i32, i32
  }
  func.func @transform_1(%arg0: i32, %arg1: i32) -> (i32, i32) {
    %c0_i32 = arith.constant 0 : i32
    return %arg0, %arg1 : i32, i32
  }
  func.func @transform_2(%arg0: i32, %arg1: i32) -> (i32, i32) {
    %c0_i32 = arith.constant 0 : i32
    %c0_i32_0 = arith.constant 0 : i32
    return %arg0, %c0_i32 : i32, i32
  }
}

</mosaic_0001>

<bundles_post_ra>
// kernel: tpu_custom_call.1
= control target key start
LH: loop header
LB: loop body
LE: loop exit
PB: predicated region body
PF: predicated region fallthrough
CT: control target
= control target key end

     0   :  { %7 = vsyncpa [#allocation5], 0  ;;  %s206_s0 = inlined_call_operand.hbm [shape: f32[2,256], index: 0, kind: input, shape index: {}]   ;;  %s207_s1 = inlined_call_operand.hbm [shape: f32[2,256], index: 1, kind: input, shape index: {}]   ;;  %s208_s2 = inlined_call_operand.vmem [shape: f32[2,1], index: 2, kind: output, shape index: {}]  }
   0x1   :  { %s14_s11 = sshll.u32 %s206_s0, 4  ;;  %s15_s11 = int_to_ptr.hbm [resolvable:$true] %s14_s11 }
   0x2   :  { %8 = vsyncpa [#allocation7], 0  ;;  %s174_s12 = smov [#allocation4]   ;;  %s25_s16 = sshll.u32 %s207_s1, 4  ;;  %s26_s16 = int_to_ptr.hbm [resolvable:$true] %s25_s16 }
   0x3   :  { %s16_s13 = sshll.u32 %s174_s12, 4  ;;  %s175_s17 = smov [#allocation6]   ;;  %s17_s13 = int_to_ptr.vmem [resolvable:$true] %s16_s13 }
   0x4   :  { %19 = dma.hbm_to_vmem [thread:$0]  %s15_s11, 64, %s17_s13, [#allocation5]  }
   0x5   :  { %s27_s18 = sshll.u32 %s175_s17, 4  ;;  %s28_s18 = int_to_ptr.vmem [resolvable:$true] %s27_s18 }
   0x6   :  { %30 = dma.hbm_to_vmem [thread:$0]  %s26_s16, 64, %s28_s18, [#allocation7]  }
   0x7   :  { %170 = dma.done.wait [#allocation5], 64  }
   0x8   :  { %171 = vsyncadd [#allocation5], 4294967232 }
   0x9   :  { %172 = dma.done.wait [#allocation7], 64  }
   0xa   :  { %173 = vsyncadd [#allocation7], 4294967232  ;;  %v46_v0 = vld [vmem:[#allocation4] sm:$0xf]  ;;  %v47_v4 = vld [vmem:[#allocation6] sm:$0xf] }
   0xb   :  { %v48_v1 = vmul.f32 0.5, %v46_v0  ;;  %vm43_vm0 = vcmask 1024   ;;  %v176_v6 = vmov 0.0   ;;  %vm60_vm1 = vcmask 1041408  }
   0xc   :  { %45 = vst.msk [vmem:[#allocation3] sm:$0x3] %vm43_vm0, %v176_v6 }
   0xd   :  { %118 = vtanh.f32 %v48_v1  ;;  %44 = vst.msk [vmem:[#allocation2] sm:$0x3] %vm43_vm0, %v176_v6 }
  0x13   :  { %v119_v2 = vpop.eup %118  ;;  %v69_v19 = vld [vmem:[#allocation3] sm:$0x3] }
  0x14   :  { %v50_v3 = vmul.f32 0.5, %v119_v2  ;;  %v52_v22 = vld [vmem:[#allocation2] sm:$0x3] }
  0x16   :  { %v51_v5 = vadd.f32 0.5, %v50_v3 }
  0x18   :  { %v53_v7 = vmul.f32 %v51_v5, %v47_v4  ;;  %v70_v8 = vadd.f32 %v51_v5, %v47_v4 }
  0x1a   :  { %55 = vst [vmem:[#allocation1] ss:$4 sm:$0xff] %v53_v7 }
  0x21   :  { %v56_v9 = vld.sshfl [vmem:[#allocation1] sm:$0xff pattern:$0x73625140]  ;;  %v57_v10 = vld.sshfl [vmem:[#allocation1 + $0x8] sm:$0xff pattern:$0x73625140] }
  0x22   :  { %72 = vst [vmem:[#allocation1] ss:$4 sm:$0xff] %v70_v8  ;;  %v61_v16 = vsel %vm60_vm1, %v56_v9, 0.0  ;;  %v62_v17 = vsel %vm60_vm1, %v57_v10, 0.0 }
  0x23   :  { %v63_v18 = vadd.f32 %v62_v17, %v61_v16 }
  0x29   :  { %v73_v11 = vld.sshfl [vmem:[#allocation1] sm:$0xff pattern:$0x73625140]  ;;  %v74_v12 = vld.sshfl [vmem:[#allocation1 + $0x8] sm:$0xff pattern:$0x73625140] }
  0x2a   :  { %v77_v13 = vsel %vm60_vm1, %v73_v11, 0.0  ;;  %v78_v14 = vsel %vm60_vm1, %v74_v12, 0.0 }
  0x2b   :  { %v79_v15 = vadd.f32 %v78_v14, %v77_v13 }
  0x2d   :  { %80 = vadd.xlane.f32.xlu0 %v79_v15 }
  0x35   :  { %64 = vadd.xlane.f32.xlu0 %v63_v18 }
  0xa0   :  { %v81_v20 = vpop.xlane.xlu0 %80 }
  0xa1   :  { %v82_v21 = vadd.f32 %v81_v20, %v69_v19 }
  0xa3   :  { %83 = vst.msk [vmem:[#allocation3] sm:$0x3] %vm43_vm0, %v82_v21 }
  0xa8   :  { %v65_v23 = vpop.xlane.xlu0 %64 }
  0xa9   :  { %v66_v24 = vadd.f32 %v65_v23, %v52_v22 }
  0xaa   :  { %v90_v25 = vld [vmem:[#allocation3] sm:$0x3] }
  0xab   :  { %v91_v26 = vadd.f32 1.0, %v90_v25  ;;  %68 = vst.msk [vmem:[#allocation2] sm:$0x3] %vm43_vm0, %v66_v24 }
  0xad   :  { %120 = vrcp.f32 %v91_v26  ;;  %v103_v32 = vand.u32 2147483648, %v91_v26  ;;  %v101_v34 = vand.u32 2147483647, %v91_v26  ;;  %vm97_vm3 = vweird.f32 %v91_v26 }
  0xaf   :  { %v104_v37 = vor.u32 1.1754944e-38, %v103_v32  ;;  %vm102_vm5 = vcmp.eq.f32.partialorder %v101_v34, 8.507059e+37 }
  0xb2   :  { %v87_v28 = vld [vmem:[#allocation2] sm:$0x3] }
  0xb3   :  { %v121_v27 = vpop.eup %120  ;;  %v88_v31 = vmul.f32 2.0, %v87_v28 }
  0xb4   :  { %v93_v29 = vmul.f32 %v121_v27, %v91_v26  ;;  %vm98_vm2 = vweird.f32 %v121_v27 }
  0xb5   :  { %v89_v35 = vadd.f32 1.0, %v88_v31  ;;  %vm99_vm4 = vmor %vm97_vm3, %vm98_vm2 }
  0xb6   :  { %v94_v30 = vsub.f32 1.0, %v93_v29 }
  0xb8   :  { %v95_v33 = vmul.f32 %v121_v27, %v94_v30 }
  0xba   :  { %v96_v36 = vadd.f32 %v121_v27, %v95_v33 }
  0xbc   :  { %v100_v38 = vsel %vm99_vm4, %v121_v27, %v96_v36 }
  0xbd   :  { %v105_v39 = vsel %vm102_vm5, %v104_v37, %v100_v38 }
  0xbe   :  { %v106_v40 = vmul.f32 %v105_v39, %v89_v35 }
  0xc0   :  { %v107_v41 = vsub.f32 1.0, %v106_v40 }
  0xc2   :  { %108 = vst.msk [vmem:[%s208_s2] sm:$0x3] %vm43_vm0, %v107_v41 }
  0xc3   :  { %113 = vsyncpa [#allocation5], 1 }
  0xc4   :  { %114 = vsyncpa [#allocation7], 1 }

</bundles_post_ra>
